<compile_context>
chip_gen: v7x
topology: tpu7x:2x2x1
jax: 0.10.0
libtpu: 0.0.40
codegen_flags: <defaults>
</compile_context>

<pallas_src>
import jax
import jax.numpy as jnp
from jax import lax
from jax.experimental import pallas as pl
from jax.experimental.pallas import tpu as pltpu

HIDDEN = 24


def _round_up(n, m):
    return ((n + m - 1) // m) * m


def _cdiv(a, b):
    return (a + b - 1) // b


# ----------------------------------------------------------------------------
# Kernel: x arrives in natural [batch_tile, state] layout; after the first
# (transposed) contraction everything lives as [features, batch_tile] so the
# bias/ReLU VPU ops and the output store are lane-dense.
# ----------------------------------------------------------------------------
def qnetwork_kernel(x_ref, w1_ref, b1_ref, w2_ref, b2_ref, w3_ref, b3_ref, o_ref):
    x = x_ref[...].astype(w1_ref.dtype)                        # bf16 [TB, S]
    nt = (((1,), (1,)), ((), ()))                              # contract last dims
    # fc1 + relu  (bf16 MXU operands, f32 accumulate / f32 VPU elementwise)
    h1 = lax.dot_general(w1_ref[...], x, nt,
                         preferred_element_type=jnp.float32)   # [H, TB]
    h1 = jnp.maximum(h1 + b1_ref[...], 0.0)
    # fc2 + relu
    h2 = jnp.dot(w2_ref[...], h1.astype(w2_ref.dtype),
                 preferred_element_type=jnp.float32)           # [H, TB]
    h2 = jnp.maximum(h2 + b2_ref[...], 0.0)
    # fc3 (no activation)
    out = jnp.dot(w3_ref[...], h2.astype(w3_ref.dtype),
                  preferred_element_type=jnp.float32)          # [A, TB]
    o_ref[...] = (out + b3_ref[...]).astype(o_ref.dtype)
    # Note: if this feeds DQN action selection, a per-sample max/argmax over
    # the first a_pad rows could be fused here (mask rows >= action_size).


# ----------------------------------------------------------------------------
# Parameter init (PyTorch nn.Linear convention: W [out, in], b [out]).
# ----------------------------------------------------------------------------
def init_params(key, state_size, action_size, hidden=HIDDEN):
    def linear_init(k, fan_in, fan_out):
        kw, kb = jax.random.split(k)
        bound = 1.0 / jnp.sqrt(jnp.float32(fan_in))
        w = jax.random.uniform(kw, (fan_out, fan_in), jnp.float32, -bound, bound)
        b = jax.random.uniform(kb, (fan_out,), jnp.float32, -bound, bound)
        return w, b

    k1, k2, k3 = jax.random.split(key, 3)
    w1, b1 = linear_init(k1, state_size, hidden)
    w2, b2 = linear_init(k2, hidden, hidden)
    w3, b3 = linear_init(k3, hidden, action_size)
    return {"w1": w1, "b1": b1, "w2": w2, "b2": b2, "w3": w3, "b3": b3}


# ----------------------------------------------------------------------------
# One-time prep: zero-pad to TPU-friendly tiles, cast MXU operands to bf16.
# bf16 weight row dims padded to 16 (sublane packing); f32 biases padded to 8.
# Call once, NOT per forward step.
# ----------------------------------------------------------------------------
def prepare_params(params, state_size, action_size, hidden=HIDDEN,
                   compute_dtype=jnp.bfloat16):
    s_pad = _round_up(state_size, 8)
    h_pad = _round_up(hidden, 16)
    a_pad = _round_up(action_size, 16)

    def pad2(w, rows, cols):
        return jnp.pad(w, ((0, rows - w.shape[0]), (0, cols - w.shape[1])))

    def pad_bias(b, rows):
        return jnp.pad(b, (0, rows - b.shape[0])).reshape(rows, 1).astype(jnp.float32)

    return {
        "w1": pad2(params["w1"], h_pad, s_pad).astype(compute_dtype),
        "w2": pad2(params["w2"], h_pad, h_pad).astype(compute_dtype),
        "w3": pad2(params["w3"], a_pad, h_pad).astype(compute_dtype),
        "b1": pad_bias(params["b1"], h_pad),
        "b2": pad_bias(params["b2"], h_pad),
        "b3": pad_bias(params["b3"], a_pad),
        "s_pad": s_pad, "h_pad": h_pad, "a_pad": a_pad,
        "state_size": state_size, "action_size": action_size,
        "compute_dtype": compute_dtype,
    }


# ----------------------------------------------------------------------------
# Pure-JAX path: mirrors the kernel's bf16-operand / f32-accumulate math.
# Doubles as the tiny-batch fallback and the correctness reference.
# ----------------------------------------------------------------------------
def reference_forward(x, prep):
    S, A = prep["state_size"], prep["action_size"]
    cdt = prep["compute_dtype"]
    xb = jnp.pad(x, ((0, 0), (0, prep["s_pad"] - S)))
    xb = xb.astype(cdt).astype(jnp.float32)
    w1 = prep["w1"].astype(jnp.float32); b1 = prep["b1"][:, 0]
    w2 = prep["w2"].astype(jnp.float32); b2 = prep["b2"][:, 0]
    w3 = prep["w3"].astype(jnp.float32); b3 = prep["b3"][:, 0]
    h1 = jnp.maximum(xb @ w1.T + b1, 0.0)
    h1 = h1.astype(cdt).astype(jnp.float32)
    h2 = jnp.maximum(h1 @ w2.T + b2, 0.0)
    h2 = h2.astype(cdt).astype(jnp.float32)
    out = h2 @ w3.T + b3
    return out[:, :A]


# ----------------------------------------------------------------------------
# Forward wrapper: x [B, state_size] f32  ->  [B, action_size] (f32 default).
#   natural_output=False returns the lane-dense [action_size, B] slab and
#   skips the final transpose (consumer keeps the transposed contract).
# ----------------------------------------------------------------------------
def qnetwork_forward(x, prep, *, block_b=4096, min_grid_steps=2,
                     use_pallas=None, natural_output=True,
                     out_dtype=jnp.float32):
    B, S = x.shape
    if use_pallas is None:
        # At tiny batches (online action selection) pallas_call is pure launch
        # overhead; a fused XLA matmul chain is strictly faster.
        use_pallas = B >= 256
    if not use_pallas:
        out = reference_forward(x, prep).astype(out_dtype)
        return out if natural_output else out.T

    s_pad, h_pad, a_pad = prep["s_pad"], prep["h_pad"], prep["a_pad"]
    A = prep["action_size"]

    # Batch tile: multiple of 128 (lane width). Target >= min_grid_steps grid
    # steps (v7x megacore) while keeping last-tile padding below 128 rows.
    block_b = max(128, _round_up(block_b, 128))
    steps = max(min_grid_steps, _cdiv(B, block_b))
    tb = max(128, min(block_b, _round_up(_cdiv(B, steps), 128)))
    b_pad = _round_up(B, tb)
    grid = (b_pad // tb,)

    if b_pad != B or s_pad != S:
        x = jnp.pad(x, ((0, b_pad - B), (0, s_pad - S)))

    const = lambda i: (0, 0)   # weights / biases stay VMEM-resident across steps

    out_t = pl.pallas_call(
        qnetwork_kernel,
        out_shape=jax.ShapeDtypeStruct((a_pad, b_pad), out_dtype),
        grid=grid,
        in_specs=[
            pl.BlockSpec((tb, s_pad), lambda i: (i, 0)),   # x: pipelined over batch
            pl.BlockSpec((h_pad, s_pad), const),           # w1
            pl.BlockSpec((h_pad, 1), const),               # b1
            pl.BlockSpec((h_pad, h_pad), const),           # w2
            pl.BlockSpec((h_pad, 1), const),               # b2
            pl.BlockSpec((a_pad, h_pad), const),           # w3
            pl.BlockSpec((a_pad, 1), const),               # b3
        ],
        out_specs=pl.BlockSpec((a_pad, tb), lambda i: (0, i)),
        compiler_params=pltpu.CompilerParams(
            dimension_semantics=("parallel",)),            # megacore on v7x
    )(x, prep["w1"], prep["b1"], prep["w2"], prep["b2"],
      prep["w3"], prep["b3"])

    if natural_output:
        return out_t[:A, :B].T     # [B, action_size]
    return out_t[:A, :B]           # lane-dense [action_size, B], no transpose


if __name__ == "__main__":
    key = jax.random.PRNGKey(0)
    k_params, k_x1, k_x2 = jax.random.split(key, 3)

    state_size, action_size = 16, 4
    params = init_params(k_params, state_size, action_size)
    prep = prepare_params(params, state_size, action_size)

    # Small batch, forced through the Pallas path (single grid step).
    x_small = jax.random.normal(k_x1, (8, state_size), jnp.float32)
    out_small = qnetwork_forward(x_small, prep, use_pallas=True)
    jax.block_until_ready(out_small)
    ref_small = reference_forward(x_small, prep)
    assert out_small.shape == (8, action_size)
    assert jnp.allclose(out_small, ref_small, atol=2e-4, rtol=2e-4), (
        float(jnp.max(jnp.abs(out_small - ref_small))))

    # Awkward batch: exercises >=2 grid steps and last-tile padding handling.
    x_big = jax.random.normal(k_x2, (300, state_size), jnp.float32)
    out_big = qnetwork_forward(x_big, prep, use_pallas=True)
    jax.block_until_ready(out_big)
    ref_big = reference_forward(x_big, prep)
    assert out_big.shape == (300, action_size)
    assert jnp.allclose(out_big, ref_big, atol=2e-4, rtol=2e-4), (
        float(jnp.max(jnp.abs(out_big - ref_big))))

    print("KERNEL_OK")
</pallas_src>

<mosaic_0001>
module attributes {stable_mosaic.version = 11 : i64} {
  func.func @qnetwork_kernel(%arg0: i32, %arg1: memref<128x16xf32, #tpu.memory_space<vmem>>, %arg2: memref<32x16xbf16, #tpu.memory_space<vmem>>, %arg3: memref<32x1xf32, #tpu.memory_space<vmem>>, %arg4: memref<32x32xbf16, #tpu.memory_space<vmem>>, %arg5: memref<32x1xf32, #tpu.memory_space<vmem>>, %arg6: memref<16x32xbf16, #tpu.memory_space<vmem>>, %arg7: memref<16x1xf32, #tpu.memory_space<vmem>>, %arg8: memref<16x128xf32, #tpu.memory_space<vmem>>) attributes {dimension_semantics = [#tpu.dimension_semantics<parallel>], iteration_bounds = array<i64: 1>, scalar_prefetch = 0 : i64, scratch_operands = 0 : i64, tpu.core_type = #tpu.core_type<tc>, window_params = [{transform_indices = @transform_0, window_bounds = array<i64: 128, 16>}, {pipeline_mode = #tpu.pipeline_mode<synchronous>, transform_indices = @transform_1, window_bounds = array<i64: 32, 16>}, {pipeline_mode = #tpu.pipeline_mode<synchronous>, transform_indices = @transform_2, window_bounds = array<i64: 32, 1>}, {pipeline_mode = #tpu.pipeline_mode<synchronous>, transform_indices = @transform_3, window_bounds = array<i64: 32, 32>}, {pipeline_mode = #tpu.pipeline_mode<synchronous>, transform_indices = @transform_4, window_bounds = array<i64: 32, 1>}, {pipeline_mode = #tpu.pipeline_mode<synchronous>, transform_indices = @transform_5, window_bounds = array<i64: 16, 32>}, {pipeline_mode = #tpu.pipeline_mode<synchronous>, transform_indices = @transform_6, window_bounds = array<i64: 16, 1>}, {transform_indices = @transform_7, window_bounds = array<i64: 16, 128>}]} {
    %c0 = arith.constant 0 : index
    %c0_0 = arith.constant 0 : index
    %0 = vector.load %arg1[%c0, %c0_0] : memref<128x16xf32, #tpu.memory_space<vmem>>, vector<128x16xf32>
    %1 = arith.truncf %0 : vector<128x16xf32> to vector<128x16xbf16>
    %c0_1 = arith.constant 0 : index
    %c0_2 = arith.constant 0 : index
    %2 = vector.load %arg2[%c0_1, %c0_2] : memref<32x16xbf16, #tpu.memory_space<vmem>>, vector<32x16xbf16>
    %cst = arith.constant dense<0.000000e+00> : vector<32x128xf32>
    %3 = tpu.matmul %2, %1, %cst {dimension_numbers = #tpu.dot_dimension_numbers<[1], [1], [0], [0], [0, 0, 1, 0], [], []>} : vector<32x16xbf16>, vector<128x16xbf16>, vector<32x128xf32> -> vector<32x128xf32>
    %c0_3 = arith.constant 0 : index
    %c0_4 = arith.constant 0 : index
    %4 = vector.load %arg3[%c0_3, %c0_4] : memref<32x1xf32, #tpu.memory_space<vmem>>, vector<32x1xf32>
    %5 = vector.broadcast %4 : vector<32x1xf32> to vector<32x128xf32>
    %6 = arith.addf %3, %5 : vector<32x128xf32>
    %cst_5 = arith.constant 0.000000e+00 : f32
    %7 = vector.broadcast %cst_5 : f32 to vector<32x128xf32>
    %8 = arith.maximumf %6, %7 : vector<32x128xf32>
    %c0_6 = arith.constant 0 : index
    %c0_7 = arith.constant 0 : index
    %9 = vector.load %arg4[%c0_6, %c0_7] : memref<32x32xbf16, #tpu.memory_space<vmem>>, vector<32x32xbf16>
    %10 = arith.truncf %8 : vector<32x128xf32> to vector<32x128xbf16>
    %cst_8 = arith.constant dense<0.000000e+00> : vector<32x128xf32>
    %11 = tpu.matmul %9, %10, %cst_8 {dimension_numbers = #tpu.dot_dimension_numbers<[1], [0], [0], [1], [0, 0, 1, 1], [], []>} : vector<32x32xbf16>, vector<32x128xbf16>, vector<32x128xf32> -> vector<32x128xf32>
    %c0_9 = arith.constant 0 : index
    %c0_10 = arith.constant 0 : index
    %12 = vector.load %arg5[%c0_9, %c0_10] : memref<32x1xf32, #tpu.memory_space<vmem>>, vector<32x1xf32>
    %13 = vector.broadcast %12 : vector<32x1xf32> to vector<32x128xf32>
    %14 = arith.addf %11, %13 : vector<32x128xf32>
    %cst_11 = arith.constant 0.000000e+00 : f32
    %15 = vector.broadcast %cst_11 : f32 to vector<32x128xf32>
    %16 = arith.maximumf %14, %15 : vector<32x128xf32>
    %c0_12 = arith.constant 0 : index
    %c0_13 = arith.constant 0 : index
    %17 = vector.load %arg6[%c0_12, %c0_13] : memref<16x32xbf16, #tpu.memory_space<vmem>>, vector<16x32xbf16>
    %18 = arith.truncf %16 : vector<32x128xf32> to vector<32x128xbf16>
    %cst_14 = arith.constant dense<0.000000e+00> : vector<16x128xf32>
    %19 = tpu.matmul %17, %18, %cst_14 {dimension_numbers = #tpu.dot_dimension_numbers<[1], [0], [0], [1], [0, 0, 1, 1], [], []>} : vector<16x32xbf16>, vector<32x128xbf16>, vector<16x128xf32> -> vector<16x128xf32>
    %c0_15 = arith.constant 0 : index
    %c0_16 = arith.constant 0 : index
    %20 = vector.load %arg7[%c0_15, %c0_16] : memref<16x1xf32, #tpu.memory_space<vmem>>, vector<16x1xf32>
    %21 = vector.broadcast %20 : vector<16x1xf32> to vector<16x128xf32>
    %22 = arith.addf %19, %21 : vector<16x128xf32>
    %c0_17 = arith.constant 0 : index
    %c0_18 = arith.constant 0 : index
    %23 = vector.load %arg8[%c0_17, %c0_18] : memref<16x128xf32, #tpu.memory_space<vmem>>, vector<16x128xf32>
    tpu.vector_store %arg8[%c0_17, %c0_18], %22 {strides = array<i32>} : memref<16x128xf32, #tpu.memory_space<vmem>>, vector<16x128xf32>,
    return
  }
  func.func @transform_0(%arg0: i32) -> (i32, i32) {
    %c0_i32 = arith.constant 0 : i32
    %c0_i32_0 = arith.constant 0 : i32
    return %arg0, %c0_i32 : i32, i32
  }
  func.func @transform_1(%arg0: i32) -> (i32, i32) {
    %c0_i32 = arith.constant 0 : i32
    %c0_i32_0 = arith.constant 0 : i32
    %c0_i32_1 = arith.constant 0 : i32
    return %c0_i32, %c0_i32_0 : i32, i32
  }
  func.func @transform_2(%arg0: i32) -> (i32, i32) {
    %c0_i32 = arith.constant 0 : i32
    %c0_i32_0 = arith.constant 0 : i32
    %c0_i32_1 = arith.constant 0 : i32
    return %c0_i32, %c0_i32_0 : i32, i32
  }
  func.func @transform_3(%arg0: i32) -> (i32, i32) {
    %c0_i32 = arith.constant 0 : i32
    %c0_i32_0 = arith.constant 0 : i32
    %c0_i32_1 = arith.constant 0 : i32
    return %c0_i32, %c0_i32_0 : i32, i32
  }
  func.func @transform_4(%arg0: i32) -> (i32, i32) {
    %c0_i32 = arith.constant 0 : i32
    %c0_i32_0 = arith.constant 0 : i32
    %c0_i32_1 = arith.constant 0 : i32
    return %c0_i32, %c0_i32_0 : i32, i32
  }
  func.func @transform_5(%arg0: i32) -> (i32, i32) {
    %c0_i32 = arith.constant 0 : i32
    %c0_i32_0 = arith.constant 0 : i32
    %c0_i32_1 = arith.constant 0 : i32
    return %c0_i32, %c0_i32_0 : i32, i32
  }
  func.func @transform_6(%arg0: i32) -> (i32, i32) {
    %c0_i32 = arith.constant 0 : i32
    %c0_i32_0 = arith.constant 0 : i32
    %c0_i32_1 = arith.constant 0 : i32
    return %c0_i32, %c0_i32_0 : i32, i32
  }
  func.func @transform_7(%arg0: i32) -> (i32, i32) {
    %c0_i32 = arith.constant 0 : i32
    %c0_i32_0 = arith.constant 0 : i32
    return %c0_i32, %arg0 : i32, i32
  }
}

</mosaic_0001>

<bundles_post_ra>
// kernel: tpu_custom_call.1
= control target key start
LH: loop header
LB: loop body
LE: loop exit
PB: predicated region body
PF: predicated region fallthrough
CT: control target
= control target key end

     0   :  { %vm90_vm0 = vcmask 130048   ;;  %v465_v5 = vmov 0   ;;  %s637_s0 = inlined_call_operand.vmem [shape: f32[128,16], index: 0, kind: input, shape index: {}]   ;;  %s638_s1 = inlined_call_operand.vmem [shape: bf16[32,16], index: 1, kind: input, shape index: {}]   ;;  %s639_s2 = inlined_call_operand.vmem [shape: f32[32,1], index: 2, kind: input, shape index: {}]   ;;  %s640_s3 = inlined_call_operand.vmem [shape: bf16[32,32], index: 3, kind: input, shape index: {}]   ;;  %s641_s4 = inlined_call_operand.vmem [shape: f32[32,1], index: 4, kind: input, shape index: {}]   ;;  %s642_s5 = inlined_call_operand.vmem [shape: bf16[16,32], index: 5, kind: input, shape index: {}]   ;;  %s643_s6 = inlined_call_operand.vmem [shape: f32[16,1], index: 6, kind: input, shape index: {}]   ;;  %s644_s7 = inlined_call_operand.hbm [shape: f32[16,128], index: 7, kind: output, shape index: {}]  }
   0x1   :  { %v28_v0 = vld [vmem:[%s637_s0] sm:$0xff]  ;;  %v29_v1 = vld [vmem:[%s637_s0 + $0x8] sm:$0xff]  ;;  %v30_v2 = vld [vmem:[%s637_s0 + $0x10] sm:$0xff]  ;;  %434 = vset.pattern.permute.xlu0 %v465_v5  ;;  %435 = vset.pattern.permute.xlu1 %v465_v5 }
   0x2   :  { %v44_v3 = vpack.c.bf16 %v29_v1, %v28_v0  ;;  %v31_v4 = vld [vmem:[%s637_s0 + $0x18] sm:$0xff]  ;;  %v32_v8 = vld [vmem:[%s637_s0 + $0x20] sm:$0xff]  ;;  %v33_v9 = vld [vmem:[%s637_s0 + $0x28] sm:$0xff] }
   0x3   :  { %v45_v6 = vpack.c.bf16 %v31_v4, %v30_v2  ;;  %v436_v10 = vld [vmem:[%s638_s1] sm:$0xff]   ;;  %v58_v12 = vld [vmem:[%s639_s2 + $0x10] sm:$0xff]  ;;  %v46_v14 = vpack.c.bf16 %v33_v9, %v32_v8  ;;  %v57_v15 = vld [vmem:[%s639_s2 + $0x8] sm:$0xff] }
   0x4   :  { %420 = vmatprep.subr.msk.bf16.mxu0 %vm90_vm0, %v44_v3  ;;  %v98_v7 = vsel %vm90_vm0, %v44_v3, 0  ;;  %v56_v11 = vld [vmem:[%s639_s2] sm:$0xff]  ;;  %400 = vmatprep.mubr.msk.bf16.mxu0 %vm90_vm0, %v436_v10  ;;  %v59_v16 = vld [vmem:[%s639_s2 + $0x18] sm:$0xff] }
   0x5   :  { %385 = vmatpush3.bf16.xpose.msra.mxu0 %v98_v7  ;;  %62 = vperm.xlu0 %434, %v56_v11   ;;  %v101_v13 = vsel %vm90_vm0, %v45_v6, 0 }
   0x6   :  { %421 = vmatprep.subr.msk.bf16.mxu0 %vm90_vm0, %v45_v6  ;;  %72 = vperm.xlu1 %435, %v58_v12  }
   0x9   :  { %67 = vperm.xlu0 %434, %v57_v15  }
   0xd   :  { %387 = vmatpush3.bf16.xpose.msra.mxu0 %v101_v13 }
   0xe   :  { %12 = vsyncpa [#allocation3], 0  ;;  %422 = vmatprep.subr.msk.bf16.mxu0 %vm90_vm0, %v46_v14  ;;  %77 = vperm.xlu1 %435, %v59_v16   ;;  %v180_v17 = vld [vmem:[%s641_s4] sm:$0xff]  ;;  %v34_v18 = vld [vmem:[%s637_s0 + $0x30] sm:$0xff]  ;;  %v104_v21 = vsel %vm90_vm0, %v46_v14, 0  ;;  %vm214_vm1 = vcmask 261120  }
   0xf   :  { %v35_v19 = vld [vmem:[%s637_s0 + $0x38] sm:$0xff]  ;;  %v181_v20 = vld [vmem:[%s641_s4 + $0x8] sm:$0xff]  ;;  %186 = vperm.xlu0 %434, %v180_v17   ;;  %v182_v23 = vld [vmem:[%s641_s4 + $0x10] sm:$0xff]  ;;  %v466_v1 = vmov 0.0   ;;  %vm467_vm2 = vmmov 0   ;;  %s468_s10 = smov [#allocation2]  }
  0x10   :  { %v47_v22 = vpack.c.bf16 %v35_v19, %v34_v18  ;;  %v183_v24 = vld [vmem:[%s641_s4 + $0x18] sm:$0xff]  ;;  %v278_v25 = vld [vmem:[%s643_s6] sm:$0xff]  ;;  %v37_v27 = vld [vmem:[%s637_s0 + $0x48] sm:$0xff]  ;;  %s346_s11 = sshll.u32 %s468_s10, 4  ;;  %s347_s11 = int_to_ptr.vmem [resolvable:$true] %s346_s11 }
  0x11   :  { %v36_v26 = vld [vmem:[%s637_s0 + $0x40] sm:$0xff]  ;;  %v279_v28 = vld [vmem:[%s643_s6 + $0x8] sm:$0xff]  ;;  %v38_v31 = vld [vmem:[%s637_s0 + $0x50] sm:$0xff]  ;;  %s441_s12 = scalar_lea.vmem %s347_s11, 256  ;;  %p446_p1 = scmp.lt.s32.totalorder %s347_s11, %s347_s11 }
  0x12   :  { %191 = vperm.xlu1 %435, %v181_v20   ;;  %v107_v29 = vsel %vm90_vm0, %v47_v22, 0  ;;  %v48_v30 = vpack.c.bf16 %v37_v27, %v36_v26  ;;  %v39_v32 = vld [vmem:[%s637_s0 + $0x58] sm:$0xff]  ;;  %v40_v35 = vld [vmem:[%s637_s0 + $0x60] sm:$0xff]  ;;  %v41_v36 = vld [vmem:[%s637_s0 + $0x68] sm:$0xff]  ;;  %p442_p0 = scmp.ne.s32.totalorder %s347_s11, %s441_s12  ;;  %p447_p2 = scmp.lt.s32.totalorder %s441_s12, %s441_s12 }
  0x13   :  { %196 = vperm.xlu0 %434, %v182_v23   ;;  %v49_v34 = vpack.c.bf16 %v39_v32, %v38_v31  ;;  %v50_v38 = vpack.c.bf16 %v41_v36, %v40_v35  ;;  %v42_v39 = vld [vmem:[%s637_s0 + $0x70] sm:$0xff]  ;;  %v43_v40 = vld [vmem:[%s637_s0 + $0x78] sm:$0xff]  ;;  %v437_v44 = vld [vmem:[%s638_s1 + $0x8] sm:$0xff]  }
  0x14   :  { %v110_v33 = vsel %vm90_vm0, %v48_v30, 0  ;;  %v51_v42 = vpack.c.bf16 %v43_v40, %v42_v39  ;;  %v438_v45 = vld [vmem:[%s640_s3] sm:$0xff]   ;;  %v439_v0 = vld [vmem:[%s640_s3 + $0x8] sm:$0xff]   ;;  %p448_p3 = por %p447_p2, %p446_p1 }
  0x15   :  { %389 = vmatpush3.bf16.xpose.msra.mxu0 %v104_v21  ;;  %v113_v37 = vsel %vm90_vm0, %v49_v34, 0  ;;  %v116_v41 = vsel %vm90_vm0, %v50_v38, 0  ;;  %408 = vmatprep.mubr.msk.bf16.mxu1 %vm214_vm1, %v438_v45  ;;  %v440_v20 = vld [vmem:[%s642_s5] sm:$0xff]  }
  0x16   :  { %423 = vmatprep.subr.msk.bf16.mxu0 %vm90_vm0, %v47_v22  ;;  %201 = vperm.xlu1 %435, %v183_v24   ;;  %v119_v43 = vsel %vm90_vm0, %v51_v42, 0  ;;  %p449_p4 = pnand %p448_p3, %p442_p0 }
  0x17   :  { %282 = vperm.xlu0 %434, %v278_v25  }
  0x1a   :  { %287 = vperm.xlu1 %435, %v279_v28  }
  0x1d   :  { %391 = vmatpush3.bf16.xpose.msra.mxu0 %v107_v29 }
  0x1e   :  { %424 = vmatprep.subr.msk.bf16.mxu0 %vm90_vm0, %v48_v30 }
  0x25   :  { %393 = vmatpush3.bf16.xpose.msra.mxu0 %v110_v33 }
  0x26   :  { %425 = vmatprep.subr.msk.bf16.mxu0 %vm90_vm0, %v49_v34 }
  0x2d   :  { %395 = vmatpush3.bf16.xpose.msra.mxu0 %v113_v37 }
  0x2e   :  { %426 = vmatprep.subr.msk.bf16.mxu0 %vm90_vm0, %v50_v38 }
  0x35   :  { %397 = vmatpush3.bf16.xpose.msra.mxu0 %v116_v41 }
  0x36   :  { %427 = vmatprep.subr.msk.bf16.mxu0 %vm90_vm0, %v51_v42 }
  0x3d   :  { %399 = vmatpush3.bf16.xpose.msra.mxu0 %v119_v43 }
  0x44   :  { %401 = vmatmul.mubr.msk.bf16.vlgmr.msra.gmra.mrb[0].mxu0 %vm90_vm0, %v437_v44 }
  0x84   :  { %v63_v47 = vpop.permute.xlu0 %62 }
  0x85   :  { %v73_v46 = vpop.permute.xlu1 %72 }
  0x88   :  { %v68_v54 = vpop.permute.xlu0 %67 }
  0x8d   :  { %v78_v51 = vpop.permute.xlu1 %77 }
  0x8e   :  { %v187_v2 = vpop.permute.xlu0 %186 }
  0x91   :  { %v192_v3 = vpop.permute.xlu1 %191 }
  0x92   :  { %v197_v4 = vpop.permute.xlu0 %196 }
  0x95   :  { %v202_v8 = vpop.permute.xlu1 %201 }
  0x96   :  { %v283_v21 = vpop.permute.xlu0 %282 }
  0x99   :  { %v288_v25 = vpop.permute.xlu1 %287 }
 0x117   :  { %v402_v48 = vpop.f32.mrb[0].mxu0 }
 0x118   :  { %v164_v49 = vadd.f32 %v402_v48, %v73_v46  ;;  %v155_v50 = vpop.f32.mrb[1].mxu0 }
 0x119   :  { %v156_v52 = vadd.f32 %v155_v50, %v63_v47  ;;  %v403_v53 = vpop.f32.mrb[2].mxu0 }
 0x11a   :  { %v167_v55 = vadd.f32 %v403_v53, %v78_v51  ;;  %v158_v56 = vpop.f32.mrb[3].mxu0  ;;  %v172_v58 = vmax.f32 %v164_v49, 0.0 }
 0x11b   :  { %v159_v57 = vadd.f32 %v158_v56, %v68_v54  ;;  %v170_v60 = vmax.f32 %v156_v52, 0.0 }
 0x11c   :  { %v173_v59 = vmax.f32 %v167_v55, 0.0 }
 0x11d   :  { %v171_v61 = vmax.f32 %v159_v57, 0.0 }
 0x11e   :  { %v179_v62 = vpack.c.bf16 %v173_v59, %v172_v58 }
 0x11f   :  { %v178_v63 = vpack.c.bf16 %v171_v61, %v170_v60 }
 0x121   :  { %404 = vmatprep.subr.bf16.mxu1 %v178_v63 }
 0x122   :  { %405 = vmatpush3.bf16.msra.mxu1 %v178_v63 }
 0x123   :  { %406 = vmatprep.subr.bf16.mxu1 %v179_v62 }
 0x126   :  { %407 = vmatpush3.bf16.msra.mxu1 %v179_v62 }
 0x127   :  { %412 = vmatprep.subr.bf16.mxu1 %v466_v1 }
 0x129   :  { %409 = vmatmul.mubr.msk.bf16.vlgmr.msra.gmra.mrb[0].mxu1 %vm214_vm1, %v439_v0 }
 0x12a   :  { %416 = vmatprep.mubr.msk.bf16.mxu1 %vm467_vm2, %v466_v1 }
 0x1fc   :  { %v410_v5 = vpop.f32.mrb[0].mxu1 }
 0x1fd   :  { %v264_v6 = vadd.f32 %v410_v5, %v197_v4  ;;  %v255_v7 = vpop.f32.mrb[1].mxu1 }
 0x1fe   :  { %v256_v9 = vadd.f32 %v255_v7, %v187_v2  ;;  %v411_v10 = vpop.f32.mrb[2].mxu1 }
 0x1ff   :  { %v267_v11 = vadd.f32 %v411_v10, %v202_v8  ;;  %v258_v12 = vpop.f32.mrb[3].mxu1  ;;  %v272_v14 = vmax.f32 %v264_v6, 0.0 }
 0x200   :  { %v259_v13 = vadd.f32 %v258_v12, %v192_v3  ;;  %v270_v16 = vmax.f32 %v256_v9, 0.0 }
 0x201   :  { %v273_v15 = vmax.f32 %v267_v11, 0.0 }
 0x202   :  { %v271_v17 = vmax.f32 %v259_v13, 0.0 }
 0x203   :  { %v277_v18 = vpack.c.bf16 %v273_v15, %v272_v14 }
 0x204   :  { %v276_v19 = vpack.c.bf16 %v271_v17, %v270_v16 }
 0x206   :  { %413 = vmatpush3.bf16.msra.mxu1 %v276_v19 }
 0x207   :  { %414 = vmatprep.subr.bf16.mxu1 %v466_v1 }
 0x20a   :  { %415 = vmatpush3.bf16.msra.mxu1 %v277_v18 }
 0x20d   :  { %417 = vmatmul.mubr.msk.bf16.vlgmr.msra.gmra.mrb[4].mxu1 %vm214_vm1, %v440_v20 }
 0x2e0   :  { %v332_v22 = vpop.f32.mrb[4].mxu1 }
 0x2e1   :  { %v333_v23 = vadd.f32 %v332_v22, %v283_v21  ;;  %v418_v24 = vpop.f32.mrb[5].mxu1 }
 0x2e2   :  { %v335_v26 = vpop.f32.mrb[6].mxu1 }
 0x2e3   :  { %339 = vst [vmem:[#allocation2] sm:$0xff] %v333_v23  ;;  %v336_v27 = vadd.f32 %v335_v26, %v288_v25  ;;  %v419_v28 = vpop.f32.mrb[7].mxu1 }
 0x2e5   :  { %340 = vst [vmem:[#allocation2 + $0x8] sm:$0xff] %v336_v27 }
 0x2e6   :  { %452 = shalt.err (!%p449_p4)
}
 0x2e7   :  { %s453_s14 = scalar_lea.hbm %s644_s7, 256 }
 0x2e8   :  { %p454_p5 = scmp.ne.s32.totalorder %s644_s7, %s453_s14  ;;  %p457_p6 = scmp.lt.u32.totalorder %s453_s14, %s644_s7 }
 0x2ea   :  { %p459_p7 = pnand %p457_p6, %p454_p5 }
 0x2ec   :  { %462 = shalt.err (!%p459_p7)
}
 0x2ed   :  { %s469_s4 = smov 128   ;;  %s470_s19 = smov 8  }
 0x2ee   :  { %352 = dma.vmem_to_hbm [thread:$0]  %s347_s11, 256, %s644_s7, [#allocation3], %s469_s4, %s469_s4, %s470_s19  }
 0x2ef   :  { %463 = dma.done.wait [#allocation3], 256  }
 0x2f0   :  { %464 = vsyncadd [#allocation3], 4294967040 }
 0x2f1   :  { %356 = vsyncpa [#allocation3], 1 }

</bundles_post_ra>
